<compile_context>
chip_gen: v6e
topology: v6e:2x2x1
jax: 0.10.0
libtpu: 0.0.40
codegen_flags: <defaults>
</compile_context>

<pallas_src>
import functools

import jax
import jax.numpy as jnp
from jax.experimental import pallas as pl
from jax.experimental.pallas import tpu as pltpu

_LANES = 128
_DEFAULT_BLOCK_ROWS = 1024        # (1024, 128) f32 = 512 KiB per block
_SMALL_N = 1024                   # below this, skip pallas_call entirely


def _dataaug_loss_kernel(x_ref, o_ref, *, threshold, high_penalty, low_penalty):
    x = x_ref[...]
    d = x - jnp.float32(threshold)
    # branchless piecewise: hp*d if d>=0 else -lp*d  (== lp*(thr-x))
    o_ref[...] = jnp.where(
        d >= 0.0,
        jnp.float32(high_penalty) * d,
        jnp.float32(-low_penalty) * d,
    )


def dataaug_loss(x, threshold=0.5, high_penalty=4.0, low_penalty=1.0,
                 block_rows=None):
    """Elementwise DataAugLoss. Scalar input -> scalar output (PyTorch parity)."""
    x = jnp.asarray(x, dtype=jnp.float32)
    orig_shape = x.shape
    n = int(x.size)

    if n == 0:
        return jnp.zeros(orig_shape, dtype=jnp.float32)

    # Small-input fast path (includes the scalar case of the PyTorch module):
    # kernel launch + layout plumbing would dwarf nanoseconds of VPU work.
    if n <= _SMALL_N:
        d = x - jnp.float32(threshold)
        return jnp.where(d >= 0.0,
                         jnp.float32(high_penalty) * d,
                         jnp.float32(-low_penalty) * d)

    # Flatten; pad only the (< 1024-element) tail if the size is ragged w.r.t.
    # the minimum (8, 128) tile. Aligned inputs take the zero-copy path.
    flat = x.reshape(-1)
    tile_elems = 8 * _LANES
    padded_n = ((n + tile_elems - 1) // tile_elems) * tile_elems
    ragged = padded_n != n
    if ragged:
        flat = jnp.pad(flat, (0, padded_n - n))
    rows = padded_n // _LANES
    x2d = flat.reshape(rows, _LANES)

    br = _DEFAULT_BLOCK_ROWS if block_rows is None else int(block_rows)
    br = min(br, rows)
    br = max(8, (br // 8) * 8)          # keep sublane multiple of 8
    grid = (pl.cdiv(rows, br),)

    kernel = functools.partial(
        _dataaug_loss_kernel,
        threshold=float(threshold),
        high_penalty=float(high_penalty),
        low_penalty=float(low_penalty),
    )

    out2d = pl.pallas_call(
        kernel,
        out_shape=jax.ShapeDtypeStruct((rows, _LANES), jnp.float32),
        grid=grid,
        in_specs=[pl.BlockSpec((br, _LANES), lambda i: (i, 0))],
        out_specs=pl.BlockSpec((br, _LANES), lambda i: (i, 0)),
        compiler_params=pltpu.CompilerParams(
            dimension_semantics=("parallel",),   # independent blocks; 2x on v7x
            vmem_limit_bytes=32 * 1024 * 1024,   # explicit: safe on v5e default
        ),
    )(x2d)

    out_flat = out2d.reshape(-1)
    if ragged:
        out_flat = out_flat[:n]
    return out_flat.reshape(orig_shape)


def _reference(x, threshold=0.5, high_penalty=4.0, low_penalty=1.0):
    x = jnp.asarray(x, dtype=jnp.float32)
    return jnp.where(
        x >= threshold, high_penalty * (x - threshold), low_penalty * (threshold - x)
    )


if __name__ == "__main__":
    # 1) Scalar input — exactly the PyTorch module's `if input >= threshold`.
    x_scalar = jax.random.uniform(jax.random.PRNGKey(0), (), dtype=jnp.float32)
    out_scalar = jax.block_until_ready(dataaug_loss(x_scalar))
    ref_scalar = _reference(x_scalar)
    assert jnp.allclose(out_scalar, ref_scalar, atol=1e-6), (out_scalar, ref_scalar)

    # 2) Elementwise batch that exercises the Pallas kernel path
    #    (2*4*16*16 = 2048 elements, aligned to (8,128) -> zero-copy path).
    x_batch = (jax.random.uniform(jax.random.PRNGKey(1), (2, 4, 16, 16),
                                  dtype=jnp.float32) * 2.0) - 0.5
    out_batch = jax.block_until_ready(dataaug_loss(x_batch))
    ref_batch = _reference(x_batch)
    assert out_batch.shape == x_batch.shape
    assert jnp.allclose(out_batch, ref_batch, atol=1e-6)

    # 3) Ragged shape + small block_rows to exercise the tiled multi-block grid
    #    and the tail-pad / slice path (17*130 = 2210 elements -> 24 rows,
    #    block_rows=16 -> grid of 2 with a partial last block).
    x_ragged = (jax.random.uniform(jax.random.PRNGKey(2), (17, 130),
                                   dtype=jnp.float32) * 3.0) - 1.0
    out_ragged = jax.block_until_ready(dataaug_loss(x_ragged, block_rows=16))
    ref_ragged = _reference(x_ragged)
    assert out_ragged.shape == x_ragged.shape
    assert jnp.allclose(out_ragged, ref_ragged, atol=1e-6)

    print("KERNEL_OK")
</pallas_src>

<mosaic_0001>
module attributes {stable_mosaic.version = 11 : i64} {
  func.func @_dataaug_loss_kernel(%arg0: i32, %arg1: memref<16x128xf32, #tpu.memory_space<vmem>>, %arg2: memref<16x128xf32, #tpu.memory_space<vmem>>) attributes {dimension_semantics = [#tpu.dimension_semantics<parallel>], iteration_bounds = array<i64: 1>, scalar_prefetch = 0 : i64, scratch_operands = 0 : i64, tpu.core_type = #tpu.core_type<tc>, window_params = [{transform_indices = @transform_0, window_bounds = array<i64: 16, 128>}, {transform_indices = @transform_1, window_bounds = array<i64: 16, 128>}]} {
    %c0 = arith.constant 0 : index
    %c0_0 = arith.constant 0 : index
    %0 = vector.load %arg1[%c0, %c0_0] : memref<16x128xf32, #tpu.memory_space<vmem>>, vector<16x128xf32>
    %cst = arith.constant 5.000000e-01 : f32
    %1 = vector.broadcast %cst : f32 to vector<16x128xf32>
    %2 = arith.subf %0, %1 : vector<16x128xf32>
    %cst_1 = arith.constant 0.000000e+00 : f32
    %3 = vector.broadcast %cst_1 : f32 to vector<16x128xf32>
    %4 = arith.cmpf oge, %2, %3 : vector<16x128xf32>
    %cst_2 = arith.constant 4.000000e+00 : f32
    %5 = vector.broadcast %cst_2 : f32 to vector<16x128xf32>
    %6 = arith.mulf %5, %2 : vector<16x128xf32>
    %cst_3 = arith.constant -1.000000e+00 : f32
    %7 = vector.broadcast %cst_3 : f32 to vector<16x128xf32>
    %8 = arith.mulf %7, %2 : vector<16x128xf32>
    %9 = arith.select %4, %6, %8 : vector<16x128xi1>, vector<16x128xf32>
    %c0_4 = arith.constant 0 : index
    %c0_5 = arith.constant 0 : index
    %10 = vector.load %arg2[%c0_4, %c0_5] : memref<16x128xf32, #tpu.memory_space<vmem>>, vector<16x128xf32>
    tpu.vector_store %arg2[%c0_4, %c0_5], %9 {strides = array<i32>} : memref<16x128xf32, #tpu.memory_space<vmem>>, vector<16x128xf32>,
    return
  }
  func.func @transform_0(%arg0: i32) -> (i32, i32) {
    %c0_i32 = arith.constant 0 : i32
    %c0_i32_0 = arith.constant 0 : i32
    return %arg0, %c0_i32 : i32, i32
  }
  func.func @transform_1(%arg0: i32) -> (i32, i32) {
    %c0_i32 = arith.constant 0 : i32
    %c0_i32_0 = arith.constant 0 : i32
    return %arg0, %c0_i32 : i32, i32
  }
}

</mosaic_0001>

<bundles_post_ra>
// kernel: tpu_custom_call.1
= control target key start
LH: loop header
LB: loop body
LE: loop exit
PB: predicated region body
PF: predicated region fallthrough
CT: control target
= control target key end

     0   :  { %6 = vsyncpa [#allocation3], 0  ;;  %s130_s0 = inlined_call_operand.hbm [shape: f32[16,128], index: 0, kind: input, shape index: {}]   ;;  %s131_s1 = inlined_call_operand.hbm [shape: f32[16,128], index: 1, kind: output, shape index: {}]  }
   0x1   :  { %7 = vsyncpa [#allocation4], 0  ;;  %s104_s6 = smov [#allocation2]  }
   0x2   :  { %s13_s7 = sshll.u32 %s104_s6, 4  ;;  %s14_s7 = int_to_ptr.vmem [resolvable:$true] %s13_s7 }
   0x3   :  { %s68_s8 = scalar_lea.vmem %s14_s7, 256  ;;  %p73_p1 = scmp.lt.s32.totalorder %s14_s7, %s14_s7 }
   0x4   :  { %p69_p0 = scmp.ne.s32.totalorder %s14_s7, %s68_s8  ;;  %p74_p2 = scmp.lt.s32.totalorder %s68_s8, %s68_s8 }
   0x6   :  { %p75_p3 = por %p74_p2, %p73_p1 }
   0x8   :  { %p76_p4 = pnand %p75_p3, %p69_p0 }
   0xa   :  { %79 = shalt.err (!%p76_p4)
}
   0xb   :  { %s105_s9 = smov 128   ;;  %s106_s10 = smov 8  }
   0xc   :  { %19 = dma.hbm_to_vmem [thread:$0]  %s130_s0, 256, %s14_s7, [#allocation3], %s105_s9, %s105_s9, %s106_s10  }
   0xd   :  { %100 = dma.done.wait [#allocation3], 256  }
   0xe   :  { %101 = vsyncadd [#allocation3], 4294967040  ;;  %v23_v0 = vld [vmem:[#allocation2] sm:$0xff]  ;;  %v24_v1 = vld [vmem:[#allocation2 + $0x8] sm:$0xff]  ;;  %s107_s13 = smov [#allocation5]  }
   0xf   :  { %v54_v2 = vadd.f32 -0.5, %v23_v0  ;;  %v55_v3 = vadd.f32 -0.5, %v24_v1  ;;  %s42_s14 = sshll.u32 %s107_s13, 4  ;;  %s43_s14 = int_to_ptr.vmem [resolvable:$true] %s42_s14 }
  0x10   :  { %s80_s0 = scalar_lea.vmem %s43_s14, 256  ;;  %p85_p6 = scmp.lt.s32.totalorder %s43_s14, %s43_s14 }
  0x11   :  { %vm27_vm0 = vcmp.ge.f32.partialorder %v54_v2, 0.0  ;;  %v29_v4 = vmul.f32 4.0, %v54_v2  ;;  %v31_v5 = vmul.f32 -1.0, %v54_v2  ;;  %vm28_vm1 = vcmp.ge.f32.partialorder %v55_v3, 0.0  ;;  %p81_p5 = scmp.ne.s32.totalorder %s43_s14, %s80_s0  ;;  %p86_p7 = scmp.lt.s32.totalorder %s80_s0, %s80_s0 }
  0x12   :  { %v30_v6 = vmul.f32 4.0, %v55_v3  ;;  %v32_v7 = vmul.f32 -1.0, %v55_v3 }
  0x13   :  { %v33_v8 = vsel %vm27_vm0, %v29_v4, %v31_v5  ;;  %p87_p8 = por %p86_p7, %p85_p6 }
  0x14   :  { %35 = vst [vmem:[#allocation5] sm:$0xff] %v33_v8  ;;  %v34_v9 = vsel %vm28_vm1, %v30_v6, %v32_v7 }
  0x15   :  { %36 = vst [vmem:[#allocation5 + $0x8] sm:$0xff] %v34_v9  ;;  %p88_p9 = pnand %p87_p8, %p81_p5 }
  0x17   :  { %91 = shalt.err (!%p88_p9)
}
  0x18   :  { %48 = dma.vmem_to_hbm [thread:$0]  %s43_s14, 256, %s131_s1, [#allocation4], %s105_s9, %s105_s9, %s106_s10  }
  0x19   :  { %102 = dma.done.wait [#allocation4], 256  }
  0x1a   :  { %103 = vsyncadd [#allocation4], 4294967040 }
  0x1b   :  { %52 = vsyncpa [#allocation3], 1 }
  0x1c   :  { %53 = vsyncpa [#allocation4], 1 }

</bundles_post_ra>
